<compile_context>
chip_gen: v5e
topology: v5e:2x2
jax: 0.10.0
libtpu: 0.0.40
codegen_flags: <defaults>
</compile_context>

<pallas_src>
import jax
import jax.numpy as jnp
from jax.experimental import pallas as pl
from jax.experimental.pallas import tpu as pltpu

INP_DIM = 16
HID_DIM = 32
OUT_DIM = 1
BATCH = 16

TM_MAX = 16384          # max batch rows per grid step (VMEM-safe on v5e/v6e/v7x)


def usualnet_kernel(x_ref, w0_ref, b0_ref, w1_ref, b1_ref, w2_ref, b2_ref, p_ref):
    # Pivot the batch tile to batch-on-lanes once (hid on sublanes, batch on the
    # 128-lane axis).  f32 transpose (safest Mosaic path), then bf16 for the MXU.
    x_t = jnp.transpose(x_ref[...]).astype(w0_ref.dtype)        # (inp, TM) bf16

    # Layer 0: (hid, inp) @ (inp, TM) -> (hid, TM), f32 accumulation on the MXU.
    h = jnp.dot(w0_ref[...], x_t, preferred_element_type=jnp.float32)
    h = jnp.maximum(h + b0_ref[...], 0.0)                       # f32 VPU (v5e-safe)

    # Layer 1: (hid, hid) @ (hid, TM) -> (hid, TM).
    h = jnp.dot(w1_ref[...], h.astype(w1_ref.dtype),
                preferred_element_type=jnp.float32)
    h = jnp.maximum(h + b1_ref[...], 0.0)

    # Output layer: (1, hid) @ (hid, TM) -> (1, TM), already lane-dense.
    logits = jnp.dot(w2_ref[...], h.astype(w2_ref.dtype),
                     preferred_element_type=jnp.float32)
    logits = logits + b2_ref[...]                               # (1,1) broadcast
    p_ref[...] = jax.nn.sigmoid(logits).astype(p_ref.dtype)
    # TODO(synk): bayes=True branch (out_mean/out_logvar + reparameterized noise)
    # not implemented -- default UsualNet config is bayes=False.


def _round_up(a, m):
    return ((a + m - 1) // m) * m


def _pick_tile(batch, tm_max):
    # Tile is always a multiple of 128 (full-lane stores, esp. v5e) and capped by
    # tm_max (VMEM budget, esp. v7x's 64 MiB).
    tm = min(tm_max, _round_up(batch, 128))
    # For mid/large batches make sure the grid has >= 2 parallel steps so v7x's
    # two TensorCores both get work (v5e/v6e single-TC: fewer, bigger steps win).
    if batch >= 2048 and pl.cdiv(batch, tm) < 2:
        tm = _round_up(pl.cdiv(batch, 2), 128)
    return tm


def usualnet_forward(x, w0, b0, w1, b1, w2, b2, *, tm_max=TM_MAX):
    """x: (batch, inp_dim) f32.  Weights in PyTorch nn.Linear layout (out, in);
    biases 1-D.  Returns sigmoid probabilities of shape (batch, 1) f32."""
    batch, inp_dim = x.shape
    hid = w0.shape[0]

    tm = _pick_tile(batch, tm_max)
    num_tiles = pl.cdiv(batch, tm)          # ragged last tile: Pallas masks it

    # Tiny operands: cast/reshape once in the wrapper.  x stays f32 in HBM.
    w0_bf = w0.astype(jnp.bfloat16)                       # (hid, inp)
    w1_bf = w1.astype(jnp.bfloat16)                       # (hid, hid)
    w2_bf = w2.astype(jnp.bfloat16)                       # (1,  hid)
    b0_c = b0.reshape(hid, 1).astype(jnp.float32)         # lane-broadcast biases
    b1_c = b1.reshape(hid, 1).astype(jnp.float32)
    b2_c = b2.reshape(1, 1).astype(jnp.float32)

    # Constant index_map -> fetched once, no per-step re-DMA.
    const = lambda r, c: pl.BlockSpec((r, c), lambda i: (0, 0))

    out = pl.pallas_call(
        usualnet_kernel,
        out_shape=jax.ShapeDtypeStruct((1, batch), jnp.float32),
        grid_spec=pltpu.PrefetchScalarGridSpec(
            num_scalar_prefetch=0,
            grid=(num_tiles,),
            in_specs=[
                pl.BlockSpec((tm, inp_dim), lambda i: (i, 0)),   # x tile (f32)
                const(hid, inp_dim),                             # w0 (out, in)
                const(hid, 1),                                   # b0
                const(hid, hid),                                 # w1 (out, in)
                const(hid, 1),                                   # b1
                const(1, hid),                                   # w2 (out, in)
                const(1, 1),                                     # b2
            ],
            # Lane-dense output: batch lives on the lane axis.
            out_specs=pl.BlockSpec((1, tm), lambda i: (0, i)),
        ),
        compiler_params=pltpu.CompilerParams(
            dimension_semantics=("parallel",),
            vmem_limit_bytes=48 * 1024 * 1024,   # within v7x's 64 MiB physical
        ),
    )(x.astype(jnp.float32), w0_bf, b0_c, w1_bf, b1_c, w2_bf, b2_c)

    return out[0, :].reshape(batch, OUT_DIM)


def init_params(key):
    # Deterministic synthetic init (uniform, PyTorch-style fan-in scale),
    # weights stored in nn.Linear layout (out_features, in_features).
    ks = jax.random.split(key, 6)

    def lin(kw, kb, fan_in, fan_out):
        bound = 1.0 / float(fan_in) ** 0.5
        w = jax.random.uniform(kw, (fan_out, fan_in), jnp.float32, -bound, bound)
        b = jax.random.uniform(kb, (fan_out,), jnp.float32, -bound, bound)
        return w, b

    w0, b0 = lin(ks[0], ks[1], INP_DIM, HID_DIM)
    w1, b1 = lin(ks[2], ks[3], HID_DIM, HID_DIM)
    w2, b2 = lin(ks[4], ks[5], HID_DIM, OUT_DIM)
    return w0, b0, w1, b1, w2, b2


def reference_forward_bf16(x, w0, b0, w1, b1, w2, b2):
    # Mirrors the kernel numerics (bf16 matmul operands, f32 accumulation).
    bf = jnp.bfloat16
    h = jnp.dot(x.astype(bf), w0.astype(bf).T, preferred_element_type=jnp.float32)
    h = jnp.maximum(h + b0[None, :], 0.0)
    h = jnp.dot(h.astype(bf), w1.astype(bf).T, preferred_element_type=jnp.float32)
    h = jnp.maximum(h + b1[None, :], 0.0)
    logits = jnp.dot(h.astype(bf), w2.astype(bf).T,
                     preferred_element_type=jnp.float32) + b2[None, :]
    return jax.nn.sigmoid(logits)


def reference_forward_f32(x, w0, b0, w1, b1, w2, b2):
    h = jnp.maximum(x @ w0.T + b0[None, :], 0.0)
    h = jnp.maximum(h @ w1.T + b1[None, :], 0.0)
    return jax.nn.sigmoid(h @ w2.T + b2[None, :])


if __name__ == "__main__":
    key = jax.random.PRNGKey(0)
    kx, kp = jax.random.split(key)
    params = init_params(kp)

    # Small demo shapes consistent with the module: batch=16, inp_dim=16, hid=32.
    x = jax.random.normal(kx, (BATCH, INP_DIM), jnp.float32)
    p = jax.block_until_ready(usualnet_forward(x, *params))
    assert p.shape == (BATCH, OUT_DIM)
    assert jnp.allclose(p, reference_forward_bf16(x, *params), atol=3e-3), \
        "mismatch vs bf16 mirror"
    assert jnp.allclose(p, reference_forward_f32(x, *params), atol=5e-2), \
        "mismatch vs f32 reference"

    # Ragged multi-tile path: 300 rows with 128-row tiles exercises the
    # unpadded boundary-masked last tile and multi-step pipelining.
    x2 = jax.random.normal(kx, (300, INP_DIM), jnp.float32)
    p2 = jax.block_until_ready(usualnet_forward(x2, *params, tm_max=128))
    assert p2.shape == (300, OUT_DIM)
    assert jnp.allclose(p2, reference_forward_bf16(x2, *params), atol=3e-3), \
        "mismatch on ragged multi-tile path"

    print("KERNEL_OK")
</pallas_src>

<mosaic_0001>
module attributes {stable_mosaic.version = 11 : i64} {
  func.func @usualnet_kernel(%arg0: i32, %arg1: memref<128x16xf32, #tpu.memory_space<vmem>>, %arg2: memref<32x16xbf16, #tpu.memory_space<vmem>>, %arg3: memref<32x1xf32, #tpu.memory_space<vmem>>, %arg4: memref<32x32xbf16, #tpu.memory_space<vmem>>, %arg5: memref<32x1xf32, #tpu.memory_space<vmem>>, %arg6: memref<1x32xbf16, #tpu.memory_space<vmem>>, %arg7: memref<1x1xf32, #tpu.memory_space<vmem>>, %arg8: memref<1x128xf32, #tpu.memory_space<vmem>>) attributes {dimension_semantics = [#tpu.dimension_semantics<parallel>], iteration_bounds = array<i64: 1>, scalar_prefetch = 0 : i64, scratch_operands = 0 : i64, tpu.core_type = #tpu.core_type<tc>, window_params = [{transform_indices = @transform_0, window_bounds = array<i64: 128, 16>}, {pipeline_mode = #tpu.pipeline_mode<synchronous>, transform_indices = @transform_1, window_bounds = array<i64: 32, 16>}, {pipeline_mode = #tpu.pipeline_mode<synchronous>, transform_indices = @transform_2, window_bounds = array<i64: 32, 1>}, {pipeline_mode = #tpu.pipeline_mode<synchronous>, transform_indices = @transform_3, window_bounds = array<i64: 32, 32>}, {pipeline_mode = #tpu.pipeline_mode<synchronous>, transform_indices = @transform_4, window_bounds = array<i64: 32, 1>}, {pipeline_mode = #tpu.pipeline_mode<synchronous>, transform_indices = @transform_5, window_bounds = array<i64: 1, 32>}, {pipeline_mode = #tpu.pipeline_mode<synchronous>, transform_indices = @transform_6, window_bounds = array<i64: 1, 1>}, {transform_indices = @transform_7, window_bounds = array<i64: 1, 128>}]} {
    %c0 = arith.constant 0 : index
    %c0_0 = arith.constant 0 : index
    %0 = vector.load %arg1[%c0, %c0_0] : memref<128x16xf32, #tpu.memory_space<vmem>>, vector<128x16xf32>
    %1 = tpu.transpose %0, [1, 0] : vector<128x16xf32> -> vector<16x128xf32>
    %2 = arith.truncf %1 : vector<16x128xf32> to vector<16x128xbf16>
    %c0_1 = arith.constant 0 : index
    %c0_2 = arith.constant 0 : index
    %3 = vector.load %arg2[%c0_1, %c0_2] : memref<32x16xbf16, #tpu.memory_space<vmem>>, vector<32x16xbf16>
    %cst = arith.constant dense<0.000000e+00> : vector<32x128xf32>
    %4 = tpu.matmul %3, %2, %cst {dimension_numbers = #tpu.dot_dimension_numbers<[1], [0], [0], [1], [0, 0, 1, 1], [], []>} : vector<32x16xbf16>, vector<16x128xbf16>, vector<32x128xf32> -> vector<32x128xf32>
    %c0_3 = arith.constant 0 : index
    %c0_4 = arith.constant 0 : index
    %5 = vector.load %arg3[%c0_3, %c0_4] : memref<32x1xf32, #tpu.memory_space<vmem>>, vector<32x1xf32>
    %6 = vector.broadcast %5 : vector<32x1xf32> to vector<32x128xf32>
    %7 = arith.addf %4, %6 : vector<32x128xf32>
    %cst_5 = arith.constant 0.000000e+00 : f32
    %8 = vector.broadcast %cst_5 : f32 to vector<32x128xf32>
    %9 = arith.maximumf %7, %8 : vector<32x128xf32>
    %c0_6 = arith.constant 0 : index
    %c0_7 = arith.constant 0 : index
    %10 = vector.load %arg4[%c0_6, %c0_7] : memref<32x32xbf16, #tpu.memory_space<vmem>>, vector<32x32xbf16>
    %11 = arith.truncf %9 : vector<32x128xf32> to vector<32x128xbf16>
    %cst_8 = arith.constant dense<0.000000e+00> : vector<32x128xf32>
    %12 = tpu.matmul %10, %11, %cst_8 {dimension_numbers = #tpu.dot_dimension_numbers<[1], [0], [0], [1], [0, 0, 1, 1], [], []>} : vector<32x32xbf16>, vector<32x128xbf16>, vector<32x128xf32> -> vector<32x128xf32>
    %c0_9 = arith.constant 0 : index
    %c0_10 = arith.constant 0 : index
    %13 = vector.load %arg5[%c0_9, %c0_10] : memref<32x1xf32, #tpu.memory_space<vmem>>, vector<32x1xf32>
    %14 = vector.broadcast %13 : vector<32x1xf32> to vector<32x128xf32>
    %15 = arith.addf %12, %14 : vector<32x128xf32>
    %cst_11 = arith.constant 0.000000e+00 : f32
    %16 = vector.broadcast %cst_11 : f32 to vector<32x128xf32>
    %17 = arith.maximumf %15, %16 : vector<32x128xf32>
    %c0_12 = arith.constant 0 : index
    %c0_13 = arith.constant 0 : index
    %18 = vector.load %arg6[%c0_12, %c0_13] : memref<1x32xbf16, #tpu.memory_space<vmem>>, vector<1x32xbf16>
    %19 = arith.truncf %17 : vector<32x128xf32> to vector<32x128xbf16>
    %cst_14 = arith.constant dense<0.000000e+00> : vector<1x128xf32>
    %20 = tpu.matmul %18, %19, %cst_14 {dimension_numbers = #tpu.dot_dimension_numbers<[1], [0], [0], [1], [0, 0, 1, 1], [], []>} : vector<1x32xbf16>, vector<32x128xbf16>, vector<1x128xf32> -> vector<1x128xf32>
    %c0_15 = arith.constant 0 : index
    %c0_16 = arith.constant 0 : index
    %21 = vector.load %arg7[%c0_15, %c0_16] : memref<1x1xf32, #tpu.memory_space<vmem>>, vector<1x1xf32>
    %22 = vector.broadcast %21 : vector<1x1xf32> to vector<1x128xf32>
    %23 = arith.addf %20, %22 : vector<1x128xf32>
    %24 = arith.negf %23 : vector<1x128xf32>
    %25 = math.exp %24 : vector<1x128xf32>
    %cst_17 = arith.constant 1.000000e+00 : f32
    %26 = vector.broadcast %cst_17 : f32 to vector<1x128xf32>
    %27 = arith.addf %26, %25 : vector<1x128xf32>
    %28 = arith.divf %26, %27 : vector<1x128xf32>
    %c0_18 = arith.constant 0 : index
    %c0_19 = arith.constant 0 : index
    %29 = vector.load %arg8[%c0_18, %c0_19] : memref<1x128xf32, #tpu.memory_space<vmem>>, vector<1x128xf32>
    tpu.vector_store %arg8[%c0_18, %c0_19], %28 {strides = array<i32>} : memref<1x128xf32, #tpu.memory_space<vmem>>, vector<1x128xf32>,
    return
  }
  func.func @transform_0(%arg0: i32) -> (i32, i32) {
    %c0_i32 = arith.constant 0 : i32
    %c0_i32_0 = arith.constant 0 : i32
    return %arg0, %c0_i32 : i32, i32
  }
  func.func @transform_1(%arg0: i32) -> (i32, i32) {
    %c0_i32 = arith.constant 0 : i32
    %c0_i32_0 = arith.constant 0 : i32
    %c0_i32_1 = arith.constant 0 : i32
    return %c0_i32, %c0_i32_0 : i32, i32
  }
  func.func @transform_2(%arg0: i32) -> (i32, i32) {
    %c0_i32 = arith.constant 0 : i32
    %c0_i32_0 = arith.constant 0 : i32
    %c0_i32_1 = arith.constant 0 : i32
    return %c0_i32, %c0_i32_0 : i32, i32
  }
  func.func @transform_3(%arg0: i32) -> (i32, i32) {
    %c0_i32 = arith.constant 0 : i32
    %c0_i32_0 = arith.constant 0 : i32
    %c0_i32_1 = arith.constant 0 : i32
    return %c0_i32, %c0_i32_0 : i32, i32
  }
  func.func @transform_4(%arg0: i32) -> (i32, i32) {
    %c0_i32 = arith.constant 0 : i32
    %c0_i32_0 = arith.constant 0 : i32
    %c0_i32_1 = arith.constant 0 : i32
    return %c0_i32, %c0_i32_0 : i32, i32
  }
  func.func @transform_5(%arg0: i32) -> (i32, i32) {
    %c0_i32 = arith.constant 0 : i32
    %c0_i32_0 = arith.constant 0 : i32
    %c0_i32_1 = arith.constant 0 : i32
    return %c0_i32, %c0_i32_0 : i32, i32
  }
  func.func @transform_6(%arg0: i32) -> (i32, i32) {
    %c0_i32 = arith.constant 0 : i32
    %c0_i32_0 = arith.constant 0 : i32
    %c0_i32_1 = arith.constant 0 : i32
    return %c0_i32, %c0_i32_0 : i32, i32
  }
  func.func @transform_7(%arg0: i32) -> (i32, i32) {
    %c0_i32 = arith.constant 0 : i32
    %c0_i32_0 = arith.constant 0 : i32
    return %c0_i32, %arg0 : i32, i32
  }
}

</mosaic_0001>

<bundles_post_ra>
// kernel: tpu_custom_call.1
= control target key start
LH: loop header
LB: loop body
LE: loop exit
PB: predicated region body
PF: predicated region fallthrough
CT: control target
= control target key end

     0   :  { %s480_s0 = inlined_call_operand.vmem [shape: f32[16,16], index: 0, kind: input, shape index: {}]   ;;  %s481_s1 = inlined_call_operand.vmem [shape: bf16[32,16], index: 1, kind: input, shape index: {}]   ;;  %s482_s2 = inlined_call_operand.vmem [shape: f32[32,1], index: 2, kind: input, shape index: {}]   ;;  %s483_s3 = inlined_call_operand.vmem [shape: bf16[32,32], index: 3, kind: input, shape index: {}]   ;;  %s484_s4 = inlined_call_operand.vmem [shape: f32[32,1], index: 4, kind: input, shape index: {}]   ;;  %s485_s5 = inlined_call_operand.vmem [shape: bf16[1,32], index: 5, kind: input, shape index: {}]   ;;  %s486_s6 = inlined_call_operand.<no memory space> [shape: f32[1,1], index: 6, kind: input, shape index: {}]   ;;  %s487_s7 = inlined_call_operand.hbm [shape: f32[1,16], index: 7, kind: output, shape index: {}]  }
   0x1   :  { %v12_v0 = vstv %s486_s6 }
   0x2   :  { %13 = vst [vmem:[#allocation2] sm:$0x1] %v12_v0 }
   0x3   :  { %v30_v1 = vld [vmem:[%s480_s0] sm:$0xff] }
   0x4   :  { %46 = vxpose.xlu0.b32.start [1/16] (narrow) %v30_v1, 16 }
   0x5   :  { %14 = vsyncpa [#allocation4], 0  ;;  %v31_v2 = vld [vmem:[%s480_s0 + $0x8] sm:$0xff]  ;;  %v32_v3 = vld [vmem:[%s480_s0 + $0x10] sm:$0xff]  ;;  %v342_v17 = vmov 0   ;;  %vm117_vm0 = vcmask 130048  }
   0x6   :  { %v33_v4 = vld [vmem:[%s480_s0 + $0x18] sm:$0xff]  ;;  %v34_v5 = vld [vmem:[%s480_s0 + $0x20] sm:$0xff]  ;;  %v35_v6 = vld [vmem:[%s480_s0 + $0x28] sm:$0xff]  ;;  %309 = vset.pattern.permute.xlu1 %v342_v17  ;;  %310 = vset.pattern.permute.xlu2 %v342_v17  ;;  %vm187_vm1 = vcmask 261120   ;;  %s270_s6 = sshll.u32 %s487_s7, 4  ;;  %s271_s6 = int_to_ptr.hbm [resolvable:$true] %s270_s6 }
   0x7   :  { %v36_v7 = vld [vmem:[%s480_s0 + $0x30] sm:$0xff]  ;;  %v37_v8 = vld [vmem:[%s480_s0 + $0x38] sm:$0xff]  ;;  %v38_v9 = vld [vmem:[%s480_s0 + $0x40] sm:$0xff] }
   0x8   :  { %v39_v10 = vld [vmem:[%s480_s0 + $0x48] sm:$0xff]  ;;  %v40_v11 = vld [vmem:[%s480_s0 + $0x50] sm:$0xff]  ;;  %v41_v12 = vld [vmem:[%s480_s0 + $0x58] sm:$0xff] }
   0x9   :  { %v42_v13 = vld [vmem:[%s480_s0 + $0x60] sm:$0xff]  ;;  %v43_v14 = vld [vmem:[%s480_s0 + $0x68] sm:$0xff]  ;;  %v44_v15 = vld [vmem:[%s480_s0 + $0x70] sm:$0xff] }
   0xa   :  { %v45_v16 = vld [vmem:[%s480_s0 + $0x78] sm:$0xff]  ;;  %v85_v18 = vld [vmem:[%s482_s2 + $0x10] sm:$0xff]  ;;  %v153_v21 = vld [vmem:[%s484_s4] sm:$0xff] }
   0xb   :  { %99 = vperm.xlu1 %309, %v85_v18   ;;  %v86_v19 = vld [vmem:[%s482_s2 + $0x18] sm:$0xff]  ;;  %v155_v20 = vld [vmem:[%s484_s4 + $0x10] sm:$0xff]  ;;  %v83_v22 = vld [vmem:[%s482_s2] sm:$0xff] }
   0xc   :  { %47 = vxpose.xlu0.b32.cont [2/16] (narrow) %v31_v2, 16  ;;  %89 = vperm.xlu2 %310, %v83_v22   ;;  %v84_v24 = vld [vmem:[%s482_s2 + $0x8] sm:$0xff]  ;;  %v220_v25 = vld [vmem:[#allocation2] sm:$0x1]  ;;  %v156_v29 = vld [vmem:[%s484_s4 + $0x18] sm:$0xff] }
   0xd   :  { %v301_v28 = vld [vmem:[%s481_s1] sm:$0xff]  ;;  %v154_v30 = vld [vmem:[%s484_s4 + $0x8] sm:$0xff] }
   0xe   :  { %v302_v31 = vld [vmem:[%s481_s1 + $0x8] sm:$0xff]  ;;  %v303_v50 = vld [vmem:[%s483_s3] sm:$0xff] }
   0xf   :  { %v304_v51 = vld [vmem:[%s483_s3 + $0x8] sm:$0xff] }
  0x13   :  { %104 = vperm.xlu1 %309, %v86_v19  }
  0x14   :  { %48 = vxpose.xlu0.b32.cont [3/16] (narrow) %v32_v3, 16  ;;  %94 = vperm.xlu2 %310, %v84_v24  }
  0x1b   :  { %169 = vperm.xlu1 %309, %v155_v20  }
  0x1c   :  { %49 = vxpose.xlu0.b32.cont [4/16] (narrow) %v33_v4, 16  ;;  %174 = vperm.xlu2 %310, %v156_v29  }
  0x23   :  { %159 = vperm.xlu1 %309, %v153_v21  }
  0x24   :  { %50 = vxpose.xlu0.b32.cont [5/16] (narrow) %v34_v5, 16  ;;  %164 = vperm.xlu2 %310, %v154_v30  }
  0x2b   :  { %223 = vperm.xlu1 %309, %v220_v25  }
  0x2c   :  { %51 = vxpose.xlu0.b32.cont [6/16] (narrow) %v35_v6, 16  ;;  %v217_v6 = vld [vmem:[%s485_s5] sm:$0x1]  ;;  %s343_s5 = smov [#allocation3]  }
  0x2d   :  { %s268_s8 = sshll.u32 %s343_s5, 4  ;;  %s269_s8 = int_to_ptr.vmem [resolvable:$true] %s268_s8 }
  0x34   :  { %52 = vxpose.xlu0.b32.cont [7/16] (narrow) %v36_v7, 16 }
  0x3c   :  { %53 = vxpose.xlu0.b32.cont [8/16] (narrow) %v37_v8, 16 }
  0x44   :  { %54 = vxpose.xlu0.b32.cont [9/16] (narrow) %v38_v9, 16 }
  0x4c   :  { %55 = vxpose.xlu0.b32.cont [10/16] (narrow) %v39_v10, 16 }
  0x54   :  { %56 = vxpose.xlu0.b32.cont [11/16] (narrow) %v40_v11, 16 }
  0x5c   :  { %57 = vxpose.xlu0.b32.cont [12/16] (narrow) %v41_v12, 16 }
  0x64   :  { %58 = vxpose.xlu0.b32.cont [13/16] (narrow) %v42_v13, 16 }
  0x66   :  { %v90_v35 = vpop.permute.xlu2 %89 }
  0x6c   :  { %59 = vxpose.xlu0.b32.cont [14/16] (narrow) %v43_v14, 16 }
  0x6e   :  { %v95_v39 = vpop.permute.xlu2 %94 }
  0x74   :  { %60 = vxpose.xlu0.b32.cont [15/16] (narrow) %v44_v15, 16 }
  0x76   :  { %v175_v53 = vpop.permute.xlu2 %174 }
  0x7c   :  { %61 = vxpose.xlu0.b32.end [16/16] (narrow) %v45_v16, 16 }
  0x7d   :  { %v100_v34 = vpop.permute.xlu1 %99 }
  0x7e   :  { %v165_v58 = vpop.permute.xlu2 %164 }
  0x85   :  { %v105_v37 = vpop.permute.xlu1 %104 }
  0x8d   :  { %v170_v54 = vpop.permute.xlu1 %169 }
  0x95   :  { %v160_v62 = vpop.permute.xlu1 %159 }
  0x9d   :  { %v224_v7 = vpop.permute.xlu1 %223 }
  0x9e   :  { %v226_v8 = vperm.slane %v224_v7, 0 }
  0xa8   :  { %v62_v23 = vpop.trf.xlu0 }
  0xb0   :  { %v63_v26 = vpop.trf.xlu0 }
  0xb1   :  { %v78_v27 = vpack.c.bf16 %v63_v26, %v62_v23 }
  0xb3   :  { %131 = vmatpush.bf16.msra.mxu0 %v78_v27 }
  0xb6   :  { %287 = vmatmul.msk.bf16.vlgmr.msra.gmra.mxu0 %vm117_vm0, %v301_v28 }
  0xc6   :  { %288 = vmatmul.msk.bf16.gmra.mxu0 %vm117_vm0, %v302_v31 }
  0xe3   :  { %311 = vset.pattern.permute.xlu0 %v342_v17 }
 0x133   :  { %v133_v32 = vpop.f32.mrf.mxu0 }
 0x134   :  { %v134_v43 = vadd.f32 %v133_v32, %v90_v35 }
 0x136   :  { %v143_v48 = vmax.f32 %v134_v43, 0.0 }
 0x13b   :  { %v135_v33 = vpop.f32.mrf.mxu0 }
 0x13c   :  { %v136_v41 = vadd.f32 %v135_v33, %v95_v39 }
 0x13e   :  { %v144_v46 = vmax.f32 %v136_v41, 0.0 }
 0x140   :  { %v151_v49 = vpack.c.bf16 %v144_v46, %v143_v48 }
 0x143   :  { %v138_v36 = vpop.f32.mrf.mxu0 }
 0x144   :  { %v139_v38 = vadd.f32 %v138_v36, %v100_v34 }
 0x146   :  { %v145_v44 = vmax.f32 %v139_v38, 0.0 }
 0x14b   :  { %v140_v40 = vpop.f32.mrf.mxu0 }
 0x14c   :  { %v141_v42 = vadd.f32 %v140_v40, %v105_v37 }
 0x14e   :  { %v146_v45 = vmax.f32 %v141_v42, 0.0 }
 0x150   :  { %v152_v47 = vpack.c.bf16 %v146_v45, %v145_v44 }
 0x152   :  { %200 = vmatpush.bf16.msra.mxu1 %v152_v47  ;;  %305 = vmatpush.bf16.msra.mxu3 %v152_v47 }
 0x156   :  { %201 = vmatpush.bf16.msra.mxu1 %v151_v49  ;;  %306 = vmatpush.bf16.msra.mxu3 %v151_v49 }
 0x159   :  { %297 = vmatmul.msk.bf16.vlgmr.msra.gmra.mxu1 %vm187_vm1, %v303_v50  ;;  %298 = vmatmul.msk.bf16.vlgmr.msra.gmra.mxu3 %vm187_vm1, %v304_v51 }
 0x1d6   :  { %v203_v52 = vpop.f32.mrf.mxu1 }
 0x1d7   :  { %v204_v63 = vadd.f32 %v203_v52, %v160_v62 }
 0x1d9   :  { %v213_v4 = vmax.f32 %v204_v63, 0.0 }
 0x1dc   :  { %v208_v55 = vpop.f32.mrf.mxu3 }
 0x1dd   :  { %v209_v57 = vadd.f32 %v208_v55, %v170_v54 }
 0x1de   :  { %v205_v56 = vpop.f32.mrf.mxu1 }
 0x1df   :  { %v206_v60 = vadd.f32 %v205_v56, %v165_v58  ;;  %v215_v0 = vmax.f32 %v209_v57, 0.0 }
 0x1e1   :  { %v214_v2 = vmax.f32 %v206_v60, 0.0 }
 0x1e3   :  { %v218_v5 = vpack.c.bf16 %v214_v2, %v213_v4 }
 0x1e4   :  { %v210_v59 = vpop.f32.mrf.mxu3 }
 0x1e5   :  { %v211_v61 = vadd.f32 %v210_v59, %v175_v53 }
 0x1e7   :  { %v216_v1 = vmax.f32 %v211_v61, 0.0 }
 0x1e9   :  { %v219_v3 = vpack.c.bf16 %v216_v1, %v215_v0 }
 0x1eb   :  { %236 = vmatpush.bf16.msra.mxu2 %v219_v3 }
 0x1ef   :  { %237 = vmatpush.bf16.msra.mxu2 %v218_v5 }
 0x1f2   :  { %299 = vmatmul.msk.bf16.vlgmr.msra.gmra.mxu2 %vm187_vm1, %v217_v6 }
 0x275   :  { %v239_v9 = vpop.f32.mrf.mxu2 }
 0x276   :  { %v240_v10 = vadd.f32 %v239_v9, %v226_v8 }
 0x278   :  { %v300_v11 = vmul.f32 -1.442695, %v240_v10 }
 0x27a   :  { %312 = vpow2.f32 %v300_v11 }
 0x27d   :  { %v241_v12 = vpop.f32.mrf.mxu2 }
 0x280   :  { %v313_v13 = vpop.eup %312 }
 0x281   :  { %v246_v14 = vadd.f32 1.0, %v313_v13 }
 0x283   :  { %314 = vrcp.f32 %v246_v14  ;;  %v258_v18 = vand.u32 2147483648, %v246_v14  ;;  %v256_v20 = vand.u32 2147483647, %v246_v14  ;;  %vm252_vm3 = vweird.f32 %v246_v14 }
 0x285   :  { %v259_v22 = vor.u32 1.1754944e-38, %v258_v18  ;;  %vm257_vm5 = vcmp.eq.f32.partialorder %v256_v20, 8.507059e+37 }
 0x289   :  { %v315_v15 = vpop.eup %314 }
 0x28a   :  { %v248_v16 = vmul.f32 %v315_v15, %v246_v14  ;;  %vm253_vm2 = vweird.f32 %v315_v15 }
 0x28b   :  { %vm254_vm4 = vmor %vm252_vm3, %vm253_vm2 }
 0x28c   :  { %v249_v17 = vsub.f32 1.0, %v248_v16 }
 0x28e   :  { %v250_v19 = vmul.f32 %v315_v15, %v249_v17 }
 0x290   :  { %v251_v21 = vadd.f32 %v315_v15, %v250_v19 }
 0x292   :  { %v255_v23 = vsel %vm254_vm4, %v315_v15, %v251_v21 }
 0x293   :  { %v260_v24 = vsel %vm257_vm5, %v259_v22, %v255_v23 }
 0x294   :  { %262 = vst [vmem:[#allocation3] sm:$0x1] %v260_v24 }
 0x295   :  { %273 = dma.vmem_to_hbm [thread:$0]  %s269_s8, 16, %s271_s6, [#allocation4]  }
 0x296   :  { %340 = dma.done.wait [#allocation4], 16  }
 0x297   :  { %341 = vsyncadd [#allocation4], 4294967280 }
 0x298   :  { %278 = vsyncpa [#allocation4], 1 }

</bundles_post_ra>
